<compile_context>
chip_gen: v6e
topology: v6e:2x2x1
jax: 0.10.0
libtpu: 0.0.40
codegen_flags: <defaults>
</compile_context>

<pallas_src>
import jax
import jax.numpy as jnp
from jax.experimental import pallas as pl
from jax.experimental.pallas import tpu as pltpu


def _spatial_dropout_kernel(mask_ref, x_ref, o_ref):
    """One grid step: mask_ref (tb, 1, E), x_ref / o_ref (tb, ts, E)."""
    m = mask_ref[:, 0, :]                       # (tb, E) rank-reduced row
    o_ref[...] = x_ref[...] * m[:, None, :]     # sublane-broadcast VPU multiply


def _make_mask(key, drop_prob: float, B: int, E: int, dtype):
    """Per-(batch, channel) inverted-dropout scale mask of shape (B, 1, E)."""
    keep = jax.random.bernoulli(key, 1.0 - drop_prob, (B, 1, E))
    return (keep.astype(jnp.float32) *
            jnp.float32(1.0 / (1.0 - drop_prob))).astype(dtype)


def _pick_tiles(B: int, S: int, E: int, itemsize: int, target_bytes: int):
    """Pick (tb, ts) so one (tb, ts, E) block is ~target_bytes."""
    row_bytes = max(1, E * itemsize)            # bytes of one (1, 1, E) row
    rows = max(1, target_bytes // row_bytes)    # rows-of-E per block
    ts = int(min(S, rows))
    if ts < S:
        # Second-minor block dim must be a multiple of 8 unless it equals S.
        ts = max(8, (ts // 8) * 8)
        tb = 1
    else:
        # Whole sequence fits in one block; span batch rows toward the target.
        tb = int(min(B, max(1, rows // S)))
    return tb, ts


def spatial_dropout(x, drop_prob: float, key, training: bool = True, *,
                    block_target_bytes: int = 3 * 1024 * 1024,
                    min_pallas_bytes: int = 4 * 1024 * 1024):
    """JAX/Pallas equivalent of SpatialDropout.forward on (B, S, E) inputs."""
    if not training or drop_prob == 0.0:
        return x
    if drop_prob >= 1.0:
        # PyTorch fills the noise with 0 and multiplies -> all zeros.
        return jnp.zeros_like(x)

    if x.ndim != 3:
        # Matches PyTorch _make_noise for arbitrary rank via plain XLA multiply.
        noise_shape = (x.shape[0],) + (1,) * (x.ndim - 2) + (x.shape[2],)
        keep = jax.random.bernoulli(key, 1.0 - drop_prob, noise_shape)
        return x * (keep.astype(jnp.float32) *
                    jnp.float32(1.0 / (1.0 - drop_prob))).astype(x.dtype)

    B, S, E = x.shape
    mask = _make_mask(key, drop_prob, B, E, x.dtype)

    itemsize = jnp.dtype(x.dtype).itemsize
    total_bytes = B * S * E * itemsize

    # Tiny tensors: custom-call / pipeline setup would exceed the memory
    # traffic.  Non-multiple-of-128 channel counts: avoid masked partial
    # stores; XLA's fused elementwise multiply is already at roofline.
    if total_bytes < min_pallas_bytes or (E % 128) != 0:
        return x * mask

    tb, ts = _pick_tiles(B, S, E, itemsize, block_target_bytes)
    grid = (pl.cdiv(B, tb), pl.cdiv(S, ts))

    return pl.pallas_call(
        _spatial_dropout_kernel,
        out_shape=jax.ShapeDtypeStruct((B, S, E), x.dtype),
        grid=grid,
        in_specs=[
            # Mask: block index constant across the inner (sequence) grid
            # axis -> stays resident in VMEM, no redundant DMA per step.
            pl.BlockSpec((tb, 1, E), lambda b, s: (b, 0, 0)),
            pl.BlockSpec((tb, ts, E), lambda b, s: (b, s, 0)),
        ],
        out_specs=pl.BlockSpec((tb, ts, E), lambda b, s: (b, s, 0)),
        compiler_params=pltpu.CompilerParams(
            dimension_semantics=("parallel", "parallel"),
            # Headroom beyond v5e's 16 MiB default; safely under v7x's 64 MiB.
            vmem_limit_bytes=32 * 1024 * 1024,
        ),
        cost_estimate=pl.CostEstimate(
            flops=B * S * E,
            transcendentals=0,
            bytes_accessed=2 * total_bytes + B * E * itemsize,
        ),
    )(mask, x)


if __name__ == "__main__":
    key = jax.random.PRNGKey(0)
    kx, kmask = jax.random.split(key)
    drop_prob = 0.3

    # --- small shape, force the Pallas path (single-block grid) ------------
    B, S, E = 2, 8, 128
    x = jax.random.normal(kx, (B, S, E), dtype=jnp.float32)
    out = jax.block_until_ready(
        spatial_dropout(x, drop_prob, kmask, training=True, min_pallas_bytes=0))

    # 1) every output element is either 0 or x / (1 - p)
    scaled = x / (1.0 - drop_prob)
    ok_vals = jnp.all(jnp.isclose(out, 0.0, atol=1e-6) |
                      jnp.isclose(out, scaled, rtol=1e-5))
    # 2) the keep/drop decision is constant across the sequence axis
    dropped = jnp.isclose(out, 0.0, atol=1e-6) & (jnp.abs(x) > 1e-6)
    ok_spatial = jnp.all(dropped == dropped[:, :1, :])
    assert bool(ok_vals), "output values are not {0, x/(1-p)}"
    assert bool(ok_spatial), "mask is not shared across the sequence axis"

    # 3) bit-exact parity with the plain-jnp reference (same key -> same mask)
    ref = x * _make_mask(kmask, drop_prob, B, E, x.dtype)
    assert bool(jnp.all(out == ref)), "Pallas result differs from reference"

    # --- multi-block grid: batch-tiled + partial sequence tail -------------
    B2, S2, E2 = 4, 40, 128
    x2 = jax.random.normal(kx, (B2, S2, E2), dtype=jnp.float32)
    out2 = jax.block_until_ready(
        spatial_dropout(x2, drop_prob, kmask, training=True,
                        min_pallas_bytes=0, block_target_bytes=16 * 1024))
    ref2 = x2 * _make_mask(kmask, drop_prob, B2, E2, x2.dtype)
    assert bool(jnp.all(out2 == ref2)), "multi-block Pallas result mismatch"

    # --- eval / p == 0 pass-through and p >= 1 all-zeros --------------------
    out_eval = spatial_dropout(x, drop_prob, kmask, training=False)
    assert bool(jnp.all(out_eval == x))
    out_p1 = spatial_dropout(x, 1.0, kmask, training=True)
    assert bool(jnp.all(out_p1 == 0.0))

    # --- default dispatch on tiny input goes through plain jnp --------------
    out_default = jax.block_until_ready(
        spatial_dropout(x, drop_prob, kmask, training=True))
    assert bool(jnp.all(out_default == ref))

    # --- bf16 path (native-dtype multiply) smoke test ------------------------
    x_bf16 = x.astype(jnp.bfloat16)
    out_bf16 = jax.block_until_ready(
        spatial_dropout(x_bf16, drop_prob, kmask, training=True,
                        min_pallas_bytes=0))
    assert out_bf16.shape == x_bf16.shape and out_bf16.dtype == jnp.bfloat16

    print("KERNEL_OK")
</pallas_src>

<mosaic_0001>
module attributes {stable_mosaic.version = 11 : i64} {
  func.func @_spatial_dropout_kernel(%arg0: i32, %arg1: i32, %arg2: memref<2x1x128xf32, #tpu.memory_space<vmem>>, %arg3: memref<2x8x128xf32, #tpu.memory_space<vmem>>, %arg4: memref<2x8x128xf32, #tpu.memory_space<vmem>>) attributes {dimension_semantics = [#tpu.dimension_semantics<parallel>, #tpu.dimension_semantics<parallel>], iteration_bounds = array<i64: 1, 1>, scalar_prefetch = 0 : i64, scratch_operands = 0 : i64, tpu.core_type = #tpu.core_type<tc>, window_params = [{transform_indices = @transform_0, window_bounds = array<i64: 2, 1, 128>}, {transform_indices = @transform_1, window_bounds = array<i64: 2, 8, 128>}, {transform_indices = @transform_2, window_bounds = array<i64: 2, 8, 128>}]} {
    %c0 = arith.constant 0 : index
    %c0_0 = arith.constant 0 : index
    %c0_1 = arith.constant 0 : index
    %0 = vector.load %arg2[%c0, %c0_0, %c0_1] : memref<2x1x128xf32, #tpu.memory_space<vmem>>, vector<2x1x128xf32>
    %1 = vector.shape_cast %0 : vector<2x1x128xf32> to vector<2x128xf32>
    %c0_2 = arith.constant 0 : index
    %c0_3 = arith.constant 0 : index
    %c0_4 = arith.constant 0 : index
    %2 = vector.load %arg3[%c0_2, %c0_3, %c0_4] : memref<2x8x128xf32, #tpu.memory_space<vmem>>, vector<2x8x128xf32>
    %3 = vector.shape_cast %1 : vector<2x128xf32> to vector<2x1x128xf32>
    %4 = vector.broadcast %3 : vector<2x1x128xf32> to vector<2x8x128xf32>
    %5 = arith.mulf %2, %4 : vector<2x8x128xf32>
    %c0_5 = arith.constant 0 : index
    %c0_6 = arith.constant 0 : index
    %c0_7 = arith.constant 0 : index
    %6 = vector.load %arg4[%c0_5, %c0_6, %c0_7] : memref<2x8x128xf32, #tpu.memory_space<vmem>>, vector<2x8x128xf32>
    tpu.vector_store %arg4[%c0_5, %c0_6, %c0_7], %5 {strides = array<i32>} : memref<2x8x128xf32, #tpu.memory_space<vmem>>, vector<2x8x128xf32>,
    return
  }
  func.func @transform_0(%arg0: i32, %arg1: i32) -> (i32, i32, i32) {
    %c0_i32 = arith.constant 0 : i32
    %c0_i32_0 = arith.constant 0 : i32
    %c0_i32_1 = arith.constant 0 : i32
    return %arg0, %c0_i32, %c0_i32_0 : i32, i32, i32
  }
  func.func @transform_1(%arg0: i32, %arg1: i32) -> (i32, i32, i32) {
    %c0_i32 = arith.constant 0 : i32
    %c0_i32_0 = arith.constant 0 : i32
    return %arg0, %arg1, %c0_i32 : i32, i32, i32
  }
  func.func @transform_2(%arg0: i32, %arg1: i32) -> (i32, i32, i32) {
    %c0_i32 = arith.constant 0 : i32
    %c0_i32_0 = arith.constant 0 : i32
    return %arg0, %arg1, %c0_i32 : i32, i32, i32
  }
}

</mosaic_0001>

<bundles_post_ra>
// kernel: tpu_custom_call.1
= control target key start
LH: loop header
LB: loop body
LE: loop exit
PB: predicated region body
PF: predicated region fallthrough
CT: control target
= control target key end

     0   :  { %7 = vsyncpa [#allocation3], 0  ;;  %s184_s0 = inlined_call_operand.hbm [shape: f32[2,1,128], index: 0, kind: input, shape index: {}]   ;;  %s185_s1 = inlined_call_operand.hbm [shape: f32[2,8,128], index: 1, kind: input, shape index: {}]   ;;  %s186_s2 = inlined_call_operand.hbm [shape: f32[2,8,128], index: 2, kind: output, shape index: {}]  }
   0x1   :  { %8 = vsyncpa [#allocation6], 0 }
   0x2   :  { %9 = vsyncpa [#allocation4], 0  ;;  %s153_s9 = smov [#allocation2]  }
   0x3   :  { %s15_s10 = sshll.u32 %s153_s9, 4  ;;  %s16_s10 = int_to_ptr.vmem [resolvable:$true] %s15_s10 }
   0x4   :  { %s95_s11 = scalar_lea.vmem %s16_s10, 32  ;;  %p100_p1 = scmp.lt.s32.totalorder %s16_s10, %s16_s10 }
   0x5   :  { %p96_p0 = scmp.ne.s32.totalorder %s16_s10, %s95_s11  ;;  %p101_p2 = scmp.lt.s32.totalorder %s95_s11, %s95_s11 }
   0x7   :  { %p102_p3 = por %p101_p2, %p100_p1 }
   0x9   :  { %p103_p4 = pnand %p102_p3, %p96_p0 }
   0xb   :  { %106 = shalt.err (!%p103_p4)
}
   0xc   :  { %s154_s12 = smov 16   ;;  %s155_s13 = smov 1  }
   0xd   :  { %21 = dma.hbm_to_vmem [thread:$0]  %s184_s0, 32, %s16_s10, [#allocation3], %s154_s12, %s154_s12, %s155_s13  }
   0xe   :  { %s156_s16 = smov [#allocation5]  }
   0xf   :  { %s27_s17 = sshll.u32 %s156_s16, 4  ;;  %s28_s17 = int_to_ptr.vmem [resolvable:$true] %s27_s17 }
  0x10   :  { %s115_s18 = scalar_lea.vmem %s28_s17, 256  ;;  %p120_p6 = scmp.lt.s32.totalorder %s28_s17, %s28_s17 }
  0x11   :  { %p116_p5 = scmp.ne.s32.totalorder %s28_s17, %s115_s18  ;;  %p121_p7 = scmp.lt.s32.totalorder %s115_s18, %s115_s18 }
  0x13   :  { %p122_p8 = por %p121_p7, %p120_p6 }
  0x15   :  { %p123_p9 = pnand %p122_p8, %p116_p5 }
  0x17   :  { %126 = shalt.err (!%p123_p9)
}
  0x18   :  { %s157_s19 = smov 128   ;;  %s158_s20 = smov 8  }
  0x19   :  { %33 = dma.hbm_to_vmem [thread:$0]  %s185_s1, 256, %s28_s17, [#allocation6], %s157_s19, %s157_s19, %s158_s20  }
  0x1a   :  { %147 = dma.done.wait [#allocation3], 32  }
  0x1b   :  { %148 = vsyncadd [#allocation3], 4294967264 }
  0x1c   :  { %149 = dma.done.wait [#allocation6], 256  }
  0x1d   :  { %150 = vsyncadd [#allocation6], 4294967040  ;;  %s159_s0 = smov [#allocation7]   ;;  %v78_v0 = vld [vmem:[#allocation2] ss:$0 sm:$0xff]  ;;  %v42_v1 = vld [vmem:[#allocation5] sm:$0xff] }
  0x1e   :  { %s65_s23 = sshll.u32 %s159_s0, 4  ;;  %v79_v2 = vld [vmem:[#allocation2 + $0x1] ss:$0 sm:$0xff]  ;;  %v56_v3 = vmul.f32 %v78_v0, %v42_v1  ;;  %v43_v4 = vld [vmem:[#allocation5 + $0x8] sm:$0xff]  ;;  %s66_s23 = int_to_ptr.vmem [resolvable:$true] %s65_s23 }
  0x1f   :  { %v57_v5 = vmul.f32 %v79_v2, %v43_v4  ;;  %s127_s24 = scalar_lea.vmem %s66_s23, 256  ;;  %p132_p11 = scmp.lt.s32.totalorder %s66_s23, %s66_s23 }
  0x20   :  { %58 = vst [vmem:[#allocation7] sm:$0xff] %v56_v3  ;;  %p128_p10 = scmp.ne.s32.totalorder %s66_s23, %s127_s24  ;;  %p133_p12 = scmp.lt.s32.totalorder %s127_s24, %s127_s24 }
  0x21   :  { %59 = vst [vmem:[#allocation7 + $0x8] sm:$0xff] %v57_v5 }
  0x22   :  { %p134_p13 = por %p133_p12, %p132_p11 }
  0x24   :  { %p135_p0 = pnand %p134_p13, %p128_p10 }
  0x26   :  { %138 = shalt.err (!%p135_p0)
}
  0x27   :  { %71 = dma.vmem_to_hbm [thread:$0]  %s66_s23, 256, %s186_s2, [#allocation4], %s157_s19, %s157_s19, %s158_s20  }
  0x28   :  { %151 = dma.done.wait [#allocation4], 256  }
  0x29   :  { %152 = vsyncadd [#allocation4], 4294967040 }
  0x2a   :  { %75 = vsyncpa [#allocation3], 1 }
  0x2b   :  { %76 = vsyncpa [#allocation6], 1 }
  0x2c   :  { %77 = vsyncpa [#allocation4], 1 }

</bundles_post_ra>
